<compile_context>
chip_gen: v5e
topology: v5e:2x2
jax: 0.10.0
libtpu: 0.0.40
codegen_flags: <defaults>
</compile_context>

<pallas_src>
from dataclasses import dataclass, field
from typing import Dict, List

import jax
import jax.numpy as jnp
from jax.experimental import pallas as pl
from jax.experimental.pallas import tpu as pltpu


def _round_up(x: int, m: int) -> int:
    return ((x + m - 1) // m) * m


def _next_pow2(x: int) -> int:
    return 1 if x <= 1 else 1 << (x - 1).bit_length()


def _physical_vmem_bytes() -> int:
    try:
        return int(pltpu.get_tpu_info().vmem_capacity_bytes)
    except Exception:
        return 64 * 1024 * 1024   # v7x-safe lower bound if the query fails


# ----------------------------- Pallas kernel ------------------------------

def _grouped_linear_kernel(rel_ids_ref, x_ref, w_ref, b_ref, o_ref):
    # rel_ids_ref: (num_row_tiles,) int32 in SMEM (consumed by index_maps only)
    # x_ref: (TM, K) compute dtype     w_ref: (K, TN) compute dtype
    # b_ref: (1, TN) f32               o_ref: (TM, TN) f32
    acc = jnp.dot(x_ref[...], w_ref[...], preferred_element_type=jnp.float32)
    o_ref[...] = (acc + b_ref[...]).astype(o_ref.dtype)      # f32 epilogue


def grouped_sparse_linear(values_list: List[jnp.ndarray],
                          w_stack: jnp.ndarray,
                          b_stack: jnp.ndarray,
                          out_dim: int,
                          *,
                          tn: int,
                          tm=None,
                          out_dtype=jnp.float32) -> List[jnp.ndarray]:
    """Apply per-relation linear layers with a single grouped Pallas matmul.

    values_list[r]: (nnz_r, k_r) float array
    w_stack:        (R, k_pad, n_pad)  compute dtype, pre-padded (K rows & N
                    cols zero-padded) -- staged once by the module
    b_stack:        (R, 1, n_pad) f32, pre-padded
    Returns list of (nnz_r, out_dim) out_dtype arrays.
    """
    num_rel = len(values_list)
    assert num_rel == int(w_stack.shape[0]) == int(b_stack.shape[0]) > 0
    for v in values_list:
        assert jnp.issubdtype(v.dtype, jnp.floating), "values must be floating"

    compute_dtype = w_stack.dtype
    k_pad = int(w_stack.shape[1])
    n_pad = int(w_stack.shape[2])
    assert tn % 128 == 0 and n_pad % tn == 0
    num_n_tiles = n_pad // tn

    cdt_size = jnp.dtype(compute_dtype).itemsize
    out_size = jnp.dtype(out_dtype).itemsize

    # --- row-tile heuristic + VMEM budget -----------------------------------
    max_nnz = max(int(v.shape[0]) for v in values_list)
    if tm is None:
        # Small relations: 128 (v5e MXU granule, less zero-row padding waste).
        # Big relations: larger tiles amortize per-step overhead and double
        # weight reuse per fetch (v6e has the VMEM for it).
        tm = 128 if max_nnz <= 256 else (256 if max_nnz <= 2048 else 512)
    tm = max(16, _round_up(tm, 16))   # bf16 sublane granule

    vmem_cap = int(0.75 * _physical_vmem_bytes())   # headroom for Mosaic scratch

    def _vmem_need(tm_):
        # double-buffered x / w / b / out tiles
        return 2 * (tm_ * k_pad * cdt_size
                    + k_pad * tn * cdt_size
                    + tn * 4
                    + tm_ * tn * out_size)

    while _vmem_need(tm) > vmem_cap and tm > 128:
        tm //= 2

    # --- fused, row-tiled activation slab in compute dtype ------------------
    padded, rel_ids, offsets = [], [], []
    total_rows = 0
    for r, v in enumerate(values_list):
        nnz, k_r = int(v.shape[0]), int(v.shape[1])
        rows_r = _round_up(max(nnz, 1), tm)
        vb = jnp.pad(v.astype(compute_dtype),
                     ((0, rows_r - nnz), (0, k_pad - k_r)))
        padded.append(vb)
        offsets.append(total_rows)
        total_rows += rows_r
        rel_ids.extend([r] * (rows_r // tm))
    x_all = padded[0] if num_rel == 1 else jnp.concatenate(padded, axis=0)
    rel_ids = jnp.asarray(rel_ids, dtype=jnp.int32)
    num_row_tiles = total_rows // tm

    # --- grid & specs: row-tile axis innermost for weight reuse -------------
    if num_n_tiles == 1:
        # 1-D grid: the (large) row-tile axis is the shardable parallel axis.
        grid = (num_row_tiles,)
        in_specs = [
            pl.BlockSpec((tm, k_pad), lambda i, rel: (i, 0)),
            pl.BlockSpec((None, k_pad, tn), lambda i, rel: (rel[i], 0, 0)),
            pl.BlockSpec((None, 1, tn), lambda i, rel: (rel[i], 0, 0)),
        ]
        out_specs = pl.BlockSpec((tm, tn), lambda i, rel: (i, 0))
        dim_sem = ("parallel",)
    else:
        # Row-tile axis last (fastest): the weight block index (rel[i], 0, j)
        # stays constant across consecutive row tiles of the same relation, so
        # the W DMA is skipped until the relation or N tile changes.
        grid = (num_n_tiles, num_row_tiles)
        in_specs = [
            pl.BlockSpec((tm, k_pad), lambda j, i, rel: (i, 0)),
            pl.BlockSpec((None, k_pad, tn), lambda j, i, rel: (rel[i], 0, j)),
            pl.BlockSpec((None, 1, tn), lambda j, i, rel: (rel[i], 0, j)),
        ]
        out_specs = pl.BlockSpec((tm, tn), lambda j, i, rel: (i, j))
        dim_sem = ("parallel", "parallel")

    flops = 2 * total_rows * k_pad * n_pad
    bytes_accessed = (x_all.size * cdt_size * num_n_tiles
                      + w_stack.size * cdt_size
                      + b_stack.size * 4
                      + total_rows * n_pad * out_size)
    cost = pl.CostEstimate(flops=flops, transcendentals=0,
                           bytes_accessed=bytes_accessed)

    vmem_limit = int(min(vmem_cap,
                         max(_vmem_need(tm) * 1.3 + (4 << 20), 32 << 20)))

    out = pl.pallas_call(
        _grouped_linear_kernel,
        out_shape=jax.ShapeDtypeStruct((total_rows, n_pad), out_dtype),
        grid_spec=pltpu.PrefetchScalarGridSpec(
            num_scalar_prefetch=1,     # rel_ids -> SMEM, fed to every index_map
            grid=grid,
            in_specs=in_specs,
            out_specs=out_specs,
        ),
        compiler_params=pltpu.CompilerParams(
            dimension_semantics=dim_sem,
            vmem_limit_bytes=vmem_limit,
        ),
        cost_estimate=cost,
    )(rel_ids, x_all, w_stack, b_stack)

    return [out[offsets[r]:offsets[r] + int(v.shape[0]), :out_dim]
            for r, v in enumerate(values_list)]


# ------------------------- Sparse data structures --------------------------

@dataclass
class SparseMatrix:
    indices: jnp.ndarray          # (2, nnz) int32
    values: jnp.ndarray           # (nnz, channels)
    shape: tuple                  # (n, m, channels)
    indices_diag: jnp.ndarray
    is_set: bool

    @property
    def n(self):
        return self.shape[0]

    @property
    def m(self):
        return self.shape[1]


@dataclass
class Relation:
    id: int
    is_set: bool


@dataclass
class Schema:
    relations: Dict[int, Relation] = field(default_factory=dict)


class SparseMatrixData(dict):
    def __init__(self, schema):
        super().__init__()
        self.schema = schema


# ------------------------ Module re-implementation -------------------------

@dataclass
class _Bucket:
    rel_ids: List[int]
    k_pad: int
    w_stack: jnp.ndarray    # (R, k_pad, n_pad) compute dtype
    b_stack: jnp.ndarray    # (R, 1, n_pad) f32


class SparseMatrixRelationLinearPallas:
    """Per-relation linear layer on sparse-matrix values (grouped Pallas matmul)."""

    def __init__(self, schema: Schema, in_dims, out_dim: int,
                 node_only: bool = False, seed: int = 0,
                 tm=None, tn=None, compute_dtype=jnp.bfloat16):
        self.schema = schema
        self.node_only = node_only
        self.out_dim = out_dim
        self.tm = tm
        self.compute_dtype = jnp.dtype(compute_dtype)

        if isinstance(in_dims, int):
            in_dims = {rid: in_dims for rid in schema.relations}
        self.in_dims = in_dims

        # Lane-dense padded output width and N tile, fixed at construction.
        n_pad = _round_up(out_dim, 128)
        if tn is None:
            tn = n_pad if n_pad <= 1024 else 512
        tn = min(_round_up(tn, 128), n_pad)
        n_pad = _round_up(n_pad, tn)
        self.tn = tn
        self.n_pad = n_pad

        # f32 master parameters (matches nn.Linear default init range).
        self.params = {}
        key = jax.random.PRNGKey(seed)
        for rid in schema.relations:
            key, kw, kb = jax.random.split(key, 3)
            in_dim = in_dims[rid]
            bound = 1.0 / (in_dim ** 0.5)
            w_t = jax.random.uniform(kw, (in_dim, out_dim), jnp.float32,
                                     minval=-bound, maxval=bound)
            b = jax.random.uniform(kb, (out_dim,), jnp.float32,
                                   minval=-bound, maxval=bound)
            self.params[rid] = (w_t, b)

        # Relations that get transformed (same rule as the PyTorch module).
        self.transform_ids = [rel.id for rel in schema.relations.values()
                              if not (node_only and rel.is_set)]

        # Bucket transformed relations by power-of-2 rounded in_dim and stage
        # the padded weight/bias stacks ONCE (params do not change per call).
        by_k: Dict[int, List[int]] = {}
        for rid in self.transform_ids:
            k_pad = max(8, _next_pow2(int(in_dims[rid])))
            by_k.setdefault(k_pad, []).append(rid)

        self.buckets: List[_Bucket] = []
        for k_pad in sorted(by_k):
            rids = by_k[k_pad]
            w_list, b_list = [], []
            for rid in rids:
                w_t, b = self.params[rid]
                k_r = int(w_t.shape[0])
                w_list.append(jnp.pad(w_t.astype(self.compute_dtype),
                                      ((0, k_pad - k_r), (0, n_pad - out_dim))))
                b_list.append(jnp.pad(b.astype(jnp.float32),
                                      (0, n_pad - out_dim)).reshape(1, n_pad))
            self.buckets.append(_Bucket(rel_ids=rids, k_pad=k_pad,
                                        w_stack=jnp.stack(w_list),
                                        b_stack=jnp.stack(b_list)))

    def __call__(self, X: SparseMatrixData) -> SparseMatrixData:
        X_out = SparseMatrixData(X.schema)

        # Pass-through for "set" relations when node_only=True.
        for rel in self.schema.relations.values():
            if self.node_only and rel.is_set:
                X_out[rel.id] = X[rel.id]

        # One grouped Pallas matmul per K-bucket.
        for bucket in self.buckets:
            values_list = [X[rid].values for rid in bucket.rel_ids]
            outs = grouped_sparse_linear(
                values_list, bucket.w_stack, bucket.b_stack, self.out_dim,
                tn=self.tn, tm=self.tm)
            for rid, values_out in zip(bucket.rel_ids, outs):
                mat = X[rid]
                shape_out = (mat.n, mat.m, values_out.shape[1])
                X_out[rid] = SparseMatrix(indices=mat.indices,
                                          values=values_out,
                                          shape=shape_out,
                                          indices_diag=mat.indices_diag,
                                          is_set=mat.is_set)
        return X_out


# --------------------------------- main ------------------------------------

def _reference(values, w_t, b, compute_dtype):
    if jnp.dtype(compute_dtype) == jnp.dtype(jnp.float32):
        return values @ w_t + b
    x = values.astype(compute_dtype).astype(jnp.float32)
    w = w_t.astype(compute_dtype).astype(jnp.float32)
    return x @ w + b


if __name__ == "__main__":
    key = jax.random.PRNGKey(0)

    # Small synthetic schema: three relations, one "set" (node) relation.
    schema = Schema(relations={0: Relation(0, is_set=True),
                               1: Relation(1, is_set=False),
                               2: Relation(2, is_set=False)})
    in_dims = {0: 8, 1: 16, 2: 16}      # two K-buckets: {8} and {16, 16}
    out_dim = 32
    rel_shapes = {0: (6, 6, 10), 1: (6, 5, 12), 2: (20, 20, 300)}   # (n, m, nnz)

    X = SparseMatrixData(schema)
    for rid, (n, m, nnz) in rel_shapes.items():
        key, kv, kr, kc = jax.random.split(key, 4)
        values = jax.random.normal(kv, (nnz, in_dims[rid]), jnp.float32)
        rows = jax.random.randint(kr, (nnz,), 0, n)
        cols = jax.random.randint(kc, (nnz,), 0, m)
        indices = jnp.stack([rows, cols]).astype(jnp.int32)
        indices_diag = jnp.arange(min(n, m), dtype=jnp.int32)
        X[rid] = SparseMatrix(indices=indices, values=values,
                              shape=(n, m, in_dims[rid]),
                              indices_diag=indices_diag,
                              is_set=schema.relations[rid].is_set)

    def check(model, X_out, atol=1e-2, rtol=1e-2):
        for rid in model.transform_ids:
            out = jax.block_until_ready(X_out[rid].values)
            w_t, b = model.params[rid]
            ref = _reference(X[rid].values, w_t, b, model.compute_dtype)
            n, m, nnz = rel_shapes[rid]
            assert out.shape == (nnz, model.out_dim)
            assert X_out[rid].shape == (n, m, model.out_dim)
            assert X_out[rid].indices is X[rid].indices
            err = float(jnp.max(jnp.abs(out - ref)))
            assert jnp.allclose(out, ref, atol=atol, rtol=rtol), (
                f"relation {rid}: max err {err}")

    # 1) Default bf16-operand / f32-accumulate path.
    model = SparseMatrixRelationLinearPallas(schema, in_dims, out_dim,
                                             node_only=False, seed=0)
    check(model, model(X))

    # 2) Strict-parity f32 fallback path.
    model_f32 = SparseMatrixRelationLinearPallas(schema, in_dims, out_dim,
                                                 node_only=False, seed=0,
                                                 compute_dtype=jnp.float32)
    check(model_f32, model_f32(X))

    # 3) node_only=True: "set" relations are passed through untouched.
    model_no = SparseMatrixRelationLinearPallas(schema, in_dims, out_dim,
                                                node_only=True, seed=0)
    X_out_no = model_no(X)
    assert X_out_no[0] is X[0]                       # pass-through
    check(model_no, X_out_no)

    # 4) Multi-N-tile path (2-D grid with the weight-reusing row-inner axis).
    model_2d = SparseMatrixRelationLinearPallas(schema, in_dims, 256,
                                                node_only=False, seed=1,
                                                tn=128)
    check(model_2d, model_2d(X))

    print("KERNEL_OK")
</pallas_src>

<mosaic_0001>
module attributes {stable_mosaic.version = 11 : i64} {
  func.func @_grouped_linear_kernel(%arg0: i32, %arg1: memref<1xi32, #tpu.memory_space<smem>>, %arg2: memref<128x8xbf16, #tpu.memory_space<vmem>>, %arg3: memref<1x8x128xbf16, #tpu.memory_space<vmem>>, %arg4: memref<1x1x128xf32, #tpu.memory_space<vmem>>, %arg5: memref<128x128xf32, #tpu.memory_space<vmem>>) attributes {dimension_semantics = [#tpu.dimension_semantics<parallel>], iteration_bounds = array<i64: 1>, scalar_prefetch = 1 : i64, scratch_operands = 0 : i64, tpu.core_type = #tpu.core_type<tc>, window_params = [{transform_indices = @transform_0, window_bounds = array<i64: 128, 8>}, {transform_indices = @transform_1, window_bounds = array<i64: 1, 8, 128>}, {transform_indices = @transform_2, window_bounds = array<i64: 1, 1, 128>}, {transform_indices = @transform_3, window_bounds = array<i64: 128, 128>}]} {
    %c0 = arith.constant 0 : index
    %c0_0 = arith.constant 0 : index
    %0 = vector.load %arg2[%c0, %c0_0] : memref<128x8xbf16, #tpu.memory_space<vmem>>, vector<128x8xbf16>
    %c0_1 = arith.constant 0 : index
    %c0_2 = arith.constant 0 : index
    %c0_3 = arith.constant 0 : index
    %1 = vector.load %arg3[%c0_1, %c0_2, %c0_3] : memref<1x8x128xbf16, #tpu.memory_space<vmem>>, vector<1x8x128xbf16>
    %2 = vector.shape_cast %1 : vector<1x8x128xbf16> to vector<8x128xbf16>
    %cst = arith.constant dense<0.000000e+00> : vector<128x128xf32>
    %3 = tpu.matmul %0, %2, %cst {dimension_numbers = #tpu.dot_dimension_numbers<[1], [0], [0], [1], [0, 0, 1, 1], [], []>} : vector<128x8xbf16>, vector<8x128xbf16>, vector<128x128xf32> -> vector<128x128xf32>
    %c0_4 = arith.constant 0 : index
    %c0_5 = arith.constant 0 : index
    %c0_6 = arith.constant 0 : index
    %4 = vector.load %arg4[%c0_4, %c0_5, %c0_6] : memref<1x1x128xf32, #tpu.memory_space<vmem>>, vector<1x1x128xf32>
    %5 = vector.shape_cast %4 : vector<1x1x128xf32> to vector<1x128xf32>
    %6 = vector.broadcast %5 : vector<1x128xf32> to vector<128x128xf32>
    %7 = arith.addf %3, %6 : vector<128x128xf32>
    %c0_7 = arith.constant 0 : index
    %c0_8 = arith.constant 0 : index
    %8 = vector.load %arg5[%c0_7, %c0_8] : memref<128x128xf32, #tpu.memory_space<vmem>>, vector<128x128xf32>
    tpu.vector_store %arg5[%c0_7, %c0_8], %7 {strides = array<i32>} : memref<128x128xf32, #tpu.memory_space<vmem>>, vector<128x128xf32>,
    return
  }
  func.func @transform_0(%arg0: i32, %arg1: memref<1xi32, #tpu.memory_space<smem>>) -> (i32, i32) {
    %c0_i32 = arith.constant 0 : i32
    %c0_i32_0 = arith.constant 0 : i32
    return %arg0, %c0_i32 : i32, i32
  }
  func.func @transform_1(%arg0: i32, %arg1: memref<1xi32, #tpu.memory_space<smem>>) -> (i32, i32, i32) {
    %0 = arith.index_cast %arg0 : i32 to index
    %1 = memref.load %arg1[%0] : memref<1xi32, #tpu.memory_space<smem>>
    %c0_i32 = arith.constant 0 : i32
    %c0_i32_0 = arith.constant 0 : i32
    %c0_i32_1 = arith.constant 0 : i32
    return %1, %c0_i32, %c0_i32_0 : i32, i32, i32
  }
  func.func @transform_2(%arg0: i32, %arg1: memref<1xi32, #tpu.memory_space<smem>>) -> (i32, i32, i32) {
    %0 = arith.index_cast %arg0 : i32 to index
    %1 = memref.load %arg1[%0] : memref<1xi32, #tpu.memory_space<smem>>
    %c0_i32 = arith.constant 0 : i32
    %c0_i32_0 = arith.constant 0 : i32
    %c0_i32_1 = arith.constant 0 : i32
    return %1, %c0_i32, %c0_i32_0 : i32, i32, i32
  }
  func.func @transform_3(%arg0: i32, %arg1: memref<1xi32, #tpu.memory_space<smem>>) -> (i32, i32) {
    %c0_i32 = arith.constant 0 : i32
    %c0_i32_0 = arith.constant 0 : i32
    return %arg0, %c0_i32 : i32, i32
  }
}

</mosaic_0001>

<bundles_post_ra>
// kernel: tpu_custom_call.1
= control target key start
LH: loop header
LB: loop body
LE: loop exit
PB: predicated region body
PF: predicated region fallthrough
CT: control target
= control target key end

     0   :  { %s392_s0 = inlined_call_operand.<no memory space> [shape: s32[1], index: 0, kind: input, shape index: {}]   ;;  %s393_s1 = inlined_call_operand.vmem [shape: bf16[128,8], index: 1, kind: input, shape index: {}]   ;;  %s394_s2 = inlined_call_operand.vmem [shape: bf16[1,8,128], index: 2, kind: input, shape index: {}]   ;;  %s395_s3 = inlined_call_operand.vmem [shape: f32[1,1,128], index: 3, kind: input, shape index: {}]   ;;  %s396_s4 = inlined_call_operand.hbm [shape: f32[128,128], index: 4, kind: output, shape index: {}]  }
   0x1   :  { %p38_p0 = scmp.lt.s32.totalorder %s392_s0, 0 }
   0x3   :  { %s398_s0 = smov (!%p38_p0, %s392_s0), 0 }
   0x4   :  { %10 = vsyncpa [#allocation5], 0  ;;  %s231_s19 = sshll.u32 %s398_s0, 2  ;;  %s46_s22 = scalar_lea.vmem %s395_s3, %s398_s0  ;;  %vm135_vm0 = vcmask 1043456   ;;  %v272_v2 = vld [vmem:[%s393_s1] sm:$0xff]  ;;  %v274_v3 = vld [vmem:[%s393_s1 + $0x10] sm:$0xff] }
   0x5   :  { %s41_s25 = scalar_lea.vmem %s394_s2, %s231_s19  ;;  %vm110_vm1 = vcmask 64512   ;;  %v276_v4 = vld [vmem:[%s393_s1 + $0x20] sm:$0xff]  ;;  %v278_v5 = vld [vmem:[%s393_s1 + $0x30] sm:$0xff]  ;;  %v273_v6 = vld [vmem:[%s393_s1 + $0x8] sm:$0xff]  ;;  %s210_s16 = sshll.u32 %s396_s4, 4  ;;  %s211_s16 = int_to_ptr.hbm [resolvable:$true] %s210_s16 }
   0x6   :  { %v65_v0 = vld [vmem:[%s41_s25] sm:$0xf]  ;;  %v275_v7 = vld [vmem:[%s393_s1 + $0x18] sm:$0xff]  ;;  %v277_v8 = vld [vmem:[%s393_s1 + $0x28] sm:$0xff]  ;;  %s314_s17 = smov 128   ;;  %s315_s18 = smov 8  }
   0x7   :  { %v137_v1 = vsel %vm135_vm0, %v65_v0, 0  ;;  %v279_v9 = vld [vmem:[%s393_s1 + $0x38] sm:$0xff]  ;;  %v286_v10 = vld [vmem:[%s46_s22] ss:$0 sm:$0xff]  ;;  %s313_s1 = smov [#allocation4]  }
   0x8   :  { %146 = vmatpush.bf16.msra.mxu0 %v137_v1  ;;  %280 = vmatpush.bf16.msra.mxu1 %v137_v1  ;;  %s208_s13 = sshll.u32 %s313_s1, 4  ;;  %s209_s13 = int_to_ptr.vmem [resolvable:$true] %s208_s13 }
   0x9   :  { %281 = vmatpush.bf16.msra.mxu2 %v137_v1  ;;  %282 = vmatpush.bf16.msra.mxu3 %v137_v1 }
   0xb   :  { %264 = vmatmul.msk.bf16.vlgmr.msra.gmra.mxu0 %vm110_vm1, %v272_v2  ;;  %266 = vmatmul.msk.bf16.vlgmr.msra.gmra.mxu1 %vm110_vm1, %v274_v3 }
   0xc   :  { %268 = vmatmul.msk.bf16.vlgmr.msra.gmra.mxu2 %vm110_vm1, %v276_v4  ;;  %270 = vmatmul.msk.bf16.vlgmr.msra.gmra.mxu3 %vm110_vm1, %v278_v5 }
  0x1b   :  { %265 = vmatmul.msk.bf16.gmra.mxu0 %vm110_vm1, %v273_v6  ;;  %267 = vmatmul.msk.bf16.gmra.mxu1 %vm110_vm1, %v275_v7 }
  0x1c   :  { %269 = vmatmul.msk.bf16.gmra.mxu2 %vm110_vm1, %v277_v8  ;;  %271 = vmatmul.msk.bf16.gmra.mxu3 %vm110_vm1, %v279_v9 }
  0x88   :  { %v148_v11 = vpop.f32.mrf.mxu0  ;;  %v158_v12 = vpop.f32.mrf.mxu1 }
  0x89   :  { %v149_v13 = vadd.f32 %v286_v10, %v148_v11  ;;  %v159_v14 = vadd.f32 %v286_v10, %v158_v12 }
  0x8b   :  { %188 = vst [vmem:[#allocation4] sm:$0xff] %v149_v13 }
  0x8c   :  { %192 = vst [vmem:[#allocation4 + $0x20] sm:$0xff] %v159_v14 }
  0x8f   :  { %v168_v15 = vpop.f32.mrf.mxu2  ;;  %v178_v16 = vpop.f32.mrf.mxu3 }
  0x90   :  { %v169_v17 = vadd.f32 %v286_v10, %v168_v15  ;;  %v179_v18 = vadd.f32 %v286_v10, %v178_v16  ;;  %v150_v19 = vpop.f32.mrf.mxu0  ;;  %v160_v20 = vpop.f32.mrf.mxu1 }
  0x91   :  { %v151_v21 = vadd.f32 %v286_v10, %v150_v19  ;;  %v161_v22 = vadd.f32 %v286_v10, %v160_v20 }
  0x92   :  { %196 = vst [vmem:[#allocation4 + $0x40] sm:$0xff] %v169_v17 }
  0x93   :  { %200 = vst [vmem:[#allocation4 + $0x60] sm:$0xff] %v179_v18 }
  0x94   :  { %189 = vst [vmem:[#allocation4 + $0x8] sm:$0xff] %v151_v21 }
  0x95   :  { %193 = vst [vmem:[#allocation4 + $0x28] sm:$0xff] %v161_v22 }
  0x97   :  { %v170_v23 = vpop.f32.mrf.mxu2  ;;  %v180_v24 = vpop.f32.mrf.mxu3 }
  0x98   :  { %v171_v25 = vadd.f32 %v286_v10, %v170_v23  ;;  %v181_v26 = vadd.f32 %v286_v10, %v180_v24  ;;  %v153_v27 = vpop.f32.mrf.mxu0  ;;  %v163_v28 = vpop.f32.mrf.mxu1 }
  0x99   :  { %v154_v29 = vadd.f32 %v286_v10, %v153_v27  ;;  %v164_v30 = vadd.f32 %v286_v10, %v163_v28 }
  0x9a   :  { %197 = vst [vmem:[#allocation4 + $0x48] sm:$0xff] %v171_v25 }
  0x9b   :  { %201 = vst [vmem:[#allocation4 + $0x68] sm:$0xff] %v181_v26 }
  0x9c   :  { %190 = vst [vmem:[#allocation4 + $0x10] sm:$0xff] %v154_v29 }
  0x9d   :  { %194 = vst [vmem:[#allocation4 + $0x30] sm:$0xff] %v164_v30 }
  0x9f   :  { %v173_v31 = vpop.f32.mrf.mxu2  ;;  %v183_v32 = vpop.f32.mrf.mxu3 }
  0xa0   :  { %v174_v33 = vadd.f32 %v286_v10, %v173_v31  ;;  %v184_v34 = vadd.f32 %v286_v10, %v183_v32  ;;  %v155_v35 = vpop.f32.mrf.mxu0  ;;  %v165_v36 = vpop.f32.mrf.mxu1 }
  0xa1   :  { %v156_v37 = vadd.f32 %v286_v10, %v155_v35  ;;  %v166_v38 = vadd.f32 %v286_v10, %v165_v36 }
  0xa2   :  { %198 = vst [vmem:[#allocation4 + $0x50] sm:$0xff] %v174_v33 }
  0xa3   :  { %202 = vst [vmem:[#allocation4 + $0x70] sm:$0xff] %v184_v34 }
  0xa4   :  { %191 = vst [vmem:[#allocation4 + $0x18] sm:$0xff] %v156_v37 }
  0xa5   :  { %195 = vst [vmem:[#allocation4 + $0x38] sm:$0xff] %v166_v38 }
  0xa7   :  { %v175_v39 = vpop.f32.mrf.mxu2  ;;  %v185_v40 = vpop.f32.mrf.mxu3 }
  0xa8   :  { %v176_v41 = vadd.f32 %v286_v10, %v175_v39  ;;  %v186_v42 = vadd.f32 %v286_v10, %v185_v40 }
  0xaa   :  { %199 = vst [vmem:[#allocation4 + $0x58] sm:$0xff] %v176_v41 }
  0xab   :  { %203 = vst [vmem:[#allocation4 + $0x78] sm:$0xff] %v186_v42 }
  0xac   :  { %216 = dma.vmem_to_hbm [thread:$0]  %s209_s13, 2048, %s211_s16, [#allocation5], %s314_s17, %s314_s17, %s315_s18  }
  0xad   :  { %311 = dma.done.wait [#allocation5], 2048  }
  0xae   :  { %312 = vsyncadd [#allocation5], 4294965248 }
  0xaf   :  { %221 = vsyncpa [#allocation5], 1 }

</bundles_post_ra>
